<compile_context>
chip_gen: v7x
topology: tpu7x:2x2x1
jax: 0.10.0
libtpu: 0.0.40
codegen_flags: <defaults>
</compile_context>

<pallas_src>
import jax
import jax.numpy as jnp
import numpy as np
from jax.experimental import pallas as pl
from jax.experimental.pallas import tpu as pltpu


# ---------------------------------------------------------------------------
# Constant (data-independent) tables — host-side numpy glue.
# ---------------------------------------------------------------------------
def gen_relative_log_coords_np(win_size):
    """mode='cr': sign(d) * log1p(|d|) over the (2H-1, 2W-1) offset grid -> [2H-1, 2W-1, 2]."""
    H, W = win_size
    rh = np.arange(-(H - 1), H, dtype=np.float32)
    rw = np.arange(-(W - 1), W, dtype=np.float32)
    t = np.stack(np.meshgrid(rh, rw, indexing="ij"), axis=-1)   # [2H-1, 2W-1, 2]
    return np.sign(t) * np.log1p(np.abs(t))


def gen_relative_position_index_np(win_size):
    """Flat [area*area] index into the (2H-1)*(2W-1) offset table.

    Equals torch.unique(rel_coords.view(-1,2), return_inverse=True, dim=0)[1]: the unique
    rows are the full Cartesian grid of offsets, so the inverse is the lexicographic rank
    (dh + H-1) * (2W-1) + (dw + W-1).
    """
    H, W = win_size
    coords = np.stack(np.meshgrid(np.arange(H), np.arange(W), indexing="ij"), 0).reshape(2, -1)
    rel = (coords[:, :, None] - coords[:, None, :]).transpose(1, 2, 0)   # [area, area, 2]
    idx = (rel[..., 0] + H - 1) * (2 * W - 1) + (rel[..., 1] + W - 1)
    return idx.reshape(-1).astype(np.int32)


# ---------------------------------------------------------------------------
# Kernel 1: bias generation (cold; runs once, hoisted out of the batch loop).
# ---------------------------------------------------------------------------
def _rel_pos_mlp_bias_kernel(coords_t_ref, w1_t_ref, b1_t_ref, w2_t_ref, b2_t_ref,
                             idx_ref, bias_ref, m_ref):
    # coords_t: [2, V]    w1_t: [hidden, 2]   b1_t: [hidden, 1]
    # w2_t:     [nH, hidden]  b2_t: [nH, 1]   idx: [1, t_aa] int32
    # bias:     [nH, t_aa]    m_ref (VMEM scratch): [nH, V] f32
    @pl.when(pl.program_id(0) == 0)
    def _():
        ct = coords_t_ref[...]
        w1t = w1_t_ref[...]
        # fc1: K=2 contraction on the VPU (avoids a degenerate-K MXU matmul), transposed
        # orientation so no in-kernel transpose is needed.
        h = w1t[:, 0:1] * ct[0:1, :] + w1t[:, 1:2] * ct[1:2, :] + b1_t_ref[...]   # [hidden, V]
        h = jnp.maximum(h, 0.0)                                                   # ReLU
        # fc2 on the MXU, computed ONCE into scratch (not per lane-tile).
        m_ref[...] = (jnp.dot(w2_t_ref[...], h, preferred_element_type=jnp.float32)
                      + b2_t_ref[...])                                            # [nH, V]
    # TODO(synk): 'swin' mode bias_act (sigmoid, *16 gain) and prefix_tokens padding are not
    # implemented; module defaults (mode='cr', prefix_tokens=0, eval-mode dropout) are covered.
    # Index gather fused as a one-hot matmul; one-hot is built in-kernel from rel_idx, so no
    # [V, AA] matrix ever touches HBM.
    V = m_ref.shape[1]
    t_aa = idx_ref.shape[1]
    rows = jax.lax.broadcasted_iota(jnp.int32, (V, t_aa), 0)
    onehot = (rows == idx_ref[...]).astype(jnp.float32)                           # [V, t_aa]
    bias_ref[...] = jnp.dot(m_ref[...], onehot,
                            preferred_element_type=jnp.float32).astype(bias_ref.dtype)


# ---------------------------------------------------------------------------
# Kernel 2: memory-bound broadcast add (the hot loop) — flattened, lane-dense.
# ---------------------------------------------------------------------------
def _bias_add_kernel(attn_ref, bias_ref, out_ref):
    # attn: (bt, F)   bias: (1, F) — same block every grid step (DMA'd once)
    out_ref[...] = attn_ref[...] + bias_ref[...]


# ---------------------------------------------------------------------------
# Generation-aware sizing heuristics.
# ---------------------------------------------------------------------------
def _vmem_config():
    """Block / VMEM targets per chip generation (conservative if the query fails)."""
    try:
        cap = int(pltpu.get_tpu_info().vmem_capacity_bytes)
    except Exception:
        cap = 0
    if cap == 0 or cap <= (96 << 20):
        # v7x-class (64 MiB/TC) or unknown: conservative cap, moderate blocks, 2 TCs.
        return dict(vmem_cap=32 << 20, target_block=6 << 20, split_for_megacore=True)
    # v5e / v6e: 128 MiB VMEM, single TensorCore -> bigger blocks, no forced split.
    return dict(vmem_cap=64 << 20, target_block=12 << 20, split_for_megacore=False)


def _choose_aa_tile(AA, V, budget_bytes=2 << 20):
    """Lane tile for kernel 1: bounds the per-tile in-kernel one-hot (V x t_aa f32)."""
    if V * AA * 4 <= budget_bytes:
        return AA
    t = (budget_bytes // (V * 4)) // 128 * 128
    return int(max(128, min(t, AA)))


def _choose_batch_tile(B, per_row_bytes, target_bytes, split_for_megacore):
    """Multi-MiB row tiles, no exact-divisor requirement (grid uses pl.cdiv)."""
    rows = max(1, int(target_bytes) // max(int(per_row_bytes), 1))
    if rows >= B:
        bt = B
    else:
        bt = (rows // 8) * 8
        if bt == 0:
            # A single 8-row block already exceeds the target (giant-window edge case);
            # take the smallest sublane-legal tile anyway.
            bt = min(8, B)
    if split_for_megacore and bt == B and B >= 16:
        # v7x: guarantee >=2 grid steps so both TensorCores get work.
        half = (((B + 1) // 2) // 8) * 8
        if half >= 8:
            bt = half
    return bt


# ---------------------------------------------------------------------------
# Forward wrapper.
# ---------------------------------------------------------------------------
def rel_pos_mlp_forward(attn, w1, b1, w2, b2, window_size, donate_attn=False):
    """attn: [B, num_heads, area, area]; w1: [2, hidden]; b1: [hidden];
       w2: [hidden, num_heads]; b2: [num_heads].

    Set donate_attn=True ONLY when the caller actually donates `attn` (e.g. via
    jax.jit(..., donate_argnums=...)); otherwise XLA inserts a defensive copy and the
    alias adds an extra read+write of the largest array.
    """
    B, nH, A, A2 = attn.shape
    H, W = window_size
    area = H * W
    assert A == A2 == area
    AA = area * area
    V = (2 * H - 1) * (2 * W - 1)
    hidden = w1.shape[1]

    # Tiny constant tables (host-side).
    coords = gen_relative_log_coords_np(window_size).reshape(-1, 2)        # [V, 2]
    rel_idx = gen_relative_position_index_np(window_size)                  # [AA] int32

    coords_t = jnp.asarray(coords.T)                                       # [2, V]
    w1_t = jnp.asarray(w1, jnp.float32).T                                  # [hidden, 2]
    b1_t = jnp.asarray(b1, jnp.float32).reshape(hidden, 1)
    w2_t = jnp.asarray(w2, jnp.float32).T                                  # [nH, hidden]
    b2_t = jnp.asarray(b2, jnp.float32).reshape(nH, 1)
    rel_idx_2d = jnp.asarray(rel_idx).reshape(1, AA)                       # [1, AA] int32

    # --- Kernel 1: bias [nH, AA] (computed once; cold). ----------------------
    t_aa = _choose_aa_tile(AA, V)
    bias = pl.pallas_call(
        _rel_pos_mlp_bias_kernel,
        out_shape=jax.ShapeDtypeStruct((nH, AA), attn.dtype),
        grid=(pl.cdiv(AA, t_aa),),
        in_specs=[
            pl.BlockSpec((2, V), lambda t: (0, 0)),
            pl.BlockSpec((hidden, 2), lambda t: (0, 0)),
            pl.BlockSpec((hidden, 1), lambda t: (0, 0)),
            pl.BlockSpec((nH, hidden), lambda t: (0, 0)),
            pl.BlockSpec((nH, 1), lambda t: (0, 0)),
            pl.BlockSpec((1, t_aa), lambda t: (0, t)),
        ],
        out_specs=pl.BlockSpec((nH, t_aa), lambda t: (0, t)),
        scratch_shapes=[pltpu.VMEM((nH, V), jnp.float32)],
        # Scratch init under pl.when(pid==0) requires sequential execution of this axis.
        compiler_params=pltpu.CompilerParams(dimension_semantics=("arbitrary",)),
    )(coords_t, w1_t, b1_t, w2_t, b2_t, rel_idx_2d)

    # --- Kernel 2: flattened, lane-dense broadcast add over attn (hot). ------
    Fdim = nH * AA
    attn2 = attn.reshape(B, Fdim)
    bias2 = bias.reshape(1, Fdim)
    itemsize = jnp.dtype(attn.dtype).itemsize
    cfg = _vmem_config()
    bt = _choose_batch_tile(B, Fdim * itemsize, cfg["target_block"], cfg["split_for_megacore"])
    block_bytes = bt * Fdim * itemsize
    bias_bytes = Fdim * itemsize
    # 2x double-buffered input + 2x output + resident bias + headroom, capped per generation.
    vmem_limit = int(min(cfg["vmem_cap"],
                         max(16 << 20, 4 * block_bytes + 2 * bias_bytes + (2 << 20))))

    out2 = pl.pallas_call(
        _bias_add_kernel,
        out_shape=jax.ShapeDtypeStruct((B, Fdim), attn.dtype),
        grid=(pl.cdiv(B, bt),),
        in_specs=[
            pl.BlockSpec((bt, Fdim), lambda b: (b, 0)),
            pl.BlockSpec((1, Fdim), lambda b: (0, 0)),   # same block every step
        ],
        out_specs=pl.BlockSpec((bt, Fdim), lambda b: (b, 0)),
        input_output_aliases=({0: 0} if donate_attn else {}),
        compiler_params=pltpu.CompilerParams(
            dimension_semantics=("parallel",),
            vmem_limit_bytes=vmem_limit),
    )(attn2, bias2)

    return out2.reshape(B, nH, area, area)


# ---------------------------------------------------------------------------
# Pure-JAX reference mirroring the PyTorch RelPosMlp forward (mode='cr', eval).
# ---------------------------------------------------------------------------
def _reference_forward(attn, w1, b1, w2, b2, window_size):
    H, W = window_size
    area = H * W
    coords = jnp.asarray(gen_relative_log_coords_np(window_size)).reshape(-1, 2)
    rel_idx = jnp.asarray(gen_relative_position_index_np(window_size))
    hi = jax.lax.Precision.HIGHEST
    h = jnp.maximum(jnp.dot(coords, w1, precision=hi) + b1, 0.0)
    m = jnp.dot(h, w2, precision=hi) + b2                                  # [V, nH]
    bias = m[rel_idx].reshape(area, area, -1).transpose(2, 0, 1)           # [nH, area, area]
    return attn + bias[None]


if __name__ == "__main__":
    window_size = (4, 4)
    num_heads = 8
    hidden_dim = 128     # module default
    batch = 4
    H, W = window_size
    area = H * W

    key = jax.random.PRNGKey(0)
    k1, k2, k3, k4, k5 = jax.random.split(key, 5)
    w1 = 0.1 * jax.random.normal(k1, (2, hidden_dim), dtype=jnp.float32)
    b1 = 0.1 * jax.random.normal(k2, (hidden_dim,), dtype=jnp.float32)
    w2 = 0.1 * jax.random.normal(k3, (hidden_dim, num_heads), dtype=jnp.float32)
    b2 = 0.1 * jax.random.normal(k4, (num_heads,), dtype=jnp.float32)
    attn = jax.random.normal(k5, (batch, num_heads, area, area), dtype=jnp.float32)

    out = rel_pos_mlp_forward(attn, w1, b1, w2, b2, window_size)
    out = jax.block_until_ready(out)

    ref = _reference_forward(attn, w1, b1, w2, b2, window_size)
    np.testing.assert_allclose(np.asarray(out), np.asarray(ref), rtol=1e-4, atol=1e-4)

    print("KERNEL_OK")
</pallas_src>

<mosaic_0001>
module attributes {stable_mosaic.version = 11 : i64} {
  func.func @_rel_pos_mlp_bias_kernel(%arg0: i32, %arg1: memref<2x49xf32, #tpu.memory_space<vmem>>, %arg2: memref<128x2xf32, #tpu.memory_space<vmem>>, %arg3: memref<128x1xf32, #tpu.memory_space<vmem>>, %arg4: memref<8x128xf32, #tpu.memory_space<vmem>>, %arg5: memref<8x1xf32, #tpu.memory_space<vmem>>, %arg6: memref<1x256xi32, #tpu.memory_space<vmem>>, %arg7: memref<8x256xf32, #tpu.memory_space<vmem>>, %arg8: memref<8x49xf32, #tpu.memory_space<vmem>>) attributes {dimension_semantics = [#tpu.dimension_semantics<arbitrary>], iteration_bounds = array<i64: 1>, scalar_prefetch = 0 : i64, scratch_operands = 1 : i64, tpu.core_type = #tpu.core_type<tc>, window_params = [{pipeline_mode = #tpu.pipeline_mode<synchronous>, transform_indices = @transform_0, window_bounds = array<i64: 2, 49>}, {pipeline_mode = #tpu.pipeline_mode<synchronous>, transform_indices = @transform_1, window_bounds = array<i64: 128, 2>}, {pipeline_mode = #tpu.pipeline_mode<synchronous>, transform_indices = @transform_2, window_bounds = array<i64: 128, 1>}, {pipeline_mode = #tpu.pipeline_mode<synchronous>, transform_indices = @transform_3, window_bounds = array<i64: 8, 128>}, {pipeline_mode = #tpu.pipeline_mode<synchronous>, transform_indices = @transform_4, window_bounds = array<i64: 8, 1>}, {transform_indices = @transform_5, window_bounds = array<i64: 1, 256>}, {transform_indices = @transform_6, window_bounds = array<i64: 8, 256>}]} {
    %c0_i32 = arith.constant 0 : i32
    %0 = arith.cmpi eq, %arg0, %c0_i32 : i32
    %1 = arith.extui %0 : i1 to i32
    %c0_i32_0 = arith.constant 0 : i32
    %2 = arith.cmpi ne, %1, %c0_i32_0 : i32
    scf.if %2 {
      %c0_6 = arith.constant 0 : index
      %c0_7 = arith.constant 0 : index
      %12 = vector.load %arg1[%c0_6, %c0_7] : memref<2x49xf32, #tpu.memory_space<vmem>>, vector<2x49xf32>
      %c0_8 = arith.constant 0 : index
      %c0_9 = arith.constant 0 : index
      %13 = vector.load %arg2[%c0_8, %c0_9] : memref<128x2xf32, #tpu.memory_space<vmem>>, vector<128x2xf32>
      %14 = vector.extract_strided_slice %13 {offsets = [0, 0], sizes = [128, 1], strides = [1, 1]} : vector<128x2xf32> to vector<128x1xf32>
      %15 = vector.extract_strided_slice %12 {offsets = [0, 0], sizes = [1, 49], strides = [1, 1]} : vector<2x49xf32> to vector<1x49xf32>
      %16 = vector.broadcast %14 : vector<128x1xf32> to vector<128x49xf32>
      %17 = vector.broadcast %15 : vector<1x49xf32> to vector<128x49xf32>
      %18 = arith.mulf %16, %17 : vector<128x49xf32>
      %19 = vector.extract_strided_slice %13 {offsets = [0, 1], sizes = [128, 1], strides = [1, 1]} : vector<128x2xf32> to vector<128x1xf32>
      %20 = vector.extract_strided_slice %12 {offsets = [1, 0], sizes = [1, 49], strides = [1, 1]} : vector<2x49xf32> to vector<1x49xf32>
      %21 = vector.broadcast %19 : vector<128x1xf32> to vector<128x49xf32>
      %22 = vector.broadcast %20 : vector<1x49xf32> to vector<128x49xf32>
      %23 = arith.mulf %21, %22 : vector<128x49xf32>
      %24 = arith.addf %18, %23 : vector<128x49xf32>
      %c0_10 = arith.constant 0 : index
      %c0_11 = arith.constant 0 : index
      %25 = vector.load %arg3[%c0_10, %c0_11] : memref<128x1xf32, #tpu.memory_space<vmem>>, vector<128x1xf32>
      %26 = vector.broadcast %25 : vector<128x1xf32> to vector<128x49xf32>
      %27 = arith.addf %24, %26 : vector<128x49xf32>
      %cst_12 = arith.constant 0.000000e+00 : f32
      %28 = vector.broadcast %cst_12 : f32 to vector<128x49xf32>
      %29 = arith.maximumf %27, %28 : vector<128x49xf32>
      %c0_13 = arith.constant 0 : index
      %c0_14 = arith.constant 0 : index
      %30 = vector.load %arg4[%c0_13, %c0_14] : memref<8x128xf32, #tpu.memory_space<vmem>>, vector<8x128xf32>
      %cst_15 = arith.constant dense<0.000000e+00> : vector<8x49xf32>
      %31 = tpu.matmul %30, %29, %cst_15 {dimension_numbers = #tpu.dot_dimension_numbers<[1], [0], [0], [1], [0, 0, 1, 1], [], []>} : vector<8x128xf32>, vector<128x49xf32>, vector<8x49xf32> -> vector<8x49xf32>
      %c0_16 = arith.constant 0 : index
      %c0_17 = arith.constant 0 : index
      %32 = vector.load %arg5[%c0_16, %c0_17] : memref<8x1xf32, #tpu.memory_space<vmem>>, vector<8x1xf32>
      %33 = vector.broadcast %32 : vector<8x1xf32> to vector<8x49xf32>
      %34 = arith.addf %31, %33 : vector<8x49xf32>
      %c0_18 = arith.constant 0 : index
      %c0_19 = arith.constant 0 : index
      %35 = vector.load %arg8[%c0_18, %c0_19] : memref<8x49xf32, #tpu.memory_space<vmem>>, vector<8x49xf32>
      tpu.vector_store %arg8[%c0_18, %c0_19], %34 {strides = array<i32>} : memref<8x49xf32, #tpu.memory_space<vmem>>, vector<8x49xf32>,
    } else {
    }
    %3 = tpu.iota {dimensions = array<i32: 0>} : vector<49x256xi32>
    %c0 = arith.constant 0 : index
    %c0_1 = arith.constant 0 : index
    %4 = vector.load %arg6[%c0, %c0_1] : memref<1x256xi32, #tpu.memory_space<vmem>>, vector<1x256xi32>
    %5 = vector.broadcast %4 : vector<1x256xi32> to vector<49x256xi32>
    %6 = arith.cmpi eq, %3, %5 : vector<49x256xi32>
    %7 = arith.extui %6 : vector<49x256xi1> to vector<49x256xi32>
    %8 = arith.sitofp %7 : vector<49x256xi32> to vector<49x256xf32>
    %c0_2 = arith.constant 0 : index
    %c0_3 = arith.constant 0 : index
    %9 = vector.load %arg8[%c0_2, %c0_3] : memref<8x49xf32, #tpu.memory_space<vmem>>, vector<8x49xf32>
    %cst = arith.constant dense<0.000000e+00> : vector<8x256xf32>
    %10 = tpu.matmul %9, %8, %cst {dimension_numbers = #tpu.dot_dimension_numbers<[1], [0], [0], [1], [0, 0, 1, 1], [], []>} : vector<8x49xf32>, vector<49x256xf32>, vector<8x256xf32> -> vector<8x256xf32>
    %c0_4 = arith.constant 0 : index
    %c0_5 = arith.constant 0 : index
    %11 = vector.load %arg7[%c0_4, %c0_5] : memref<8x256xf32, #tpu.memory_space<vmem>>, vector<8x256xf32>
    tpu.vector_store %arg7[%c0_4, %c0_5], %10 {strides = array<i32>} : memref<8x256xf32, #tpu.memory_space<vmem>>, vector<8x256xf32>,
    return
  }
  func.func @transform_0(%arg0: i32) -> (i32, i32) {
    %c0_i32 = arith.constant 0 : i32
    %c0_i32_0 = arith.constant 0 : i32
    %c0_i32_1 = arith.constant 0 : i32
    return %c0_i32, %c0_i32_0 : i32, i32
  }
  func.func @transform_1(%arg0: i32) -> (i32, i32) {
    %c0_i32 = arith.constant 0 : i32
    %c0_i32_0 = arith.constant 0 : i32
    %c0_i32_1 = arith.constant 0 : i32
    return %c0_i32, %c0_i32_0 : i32, i32
  }
  func.func @transform_2(%arg0: i32) -> (i32, i32) {
    %c0_i32 = arith.constant 0 : i32
    %c0_i32_0 = arith.constant 0 : i32
    %c0_i32_1 = arith.constant 0 : i32
    return %c0_i32, %c0_i32_0 : i32, i32
  }
  func.func @transform_3(%arg0: i32) -> (i32, i32) {
    %c0_i32 = arith.constant 0 : i32
    %c0_i32_0 = arith.constant 0 : i32
    %c0_i32_1 = arith.constant 0 : i32
    return %c0_i32, %c0_i32_0 : i32, i32
  }
  func.func @transform_4(%arg0: i32) -> (i32, i32) {
    %c0_i32 = arith.constant 0 : i32
    %c0_i32_0 = arith.constant 0 : i32
    %c0_i32_1 = arith.constant 0 : i32
    return %c0_i32, %c0_i32_0 : i32, i32
  }
  func.func @transform_5(%arg0: i32) -> (i32, i32) {
    %c0_i32 = arith.constant 0 : i32
    %c0_i32_0 = arith.constant 0 : i32
    return %c0_i32, %arg0 : i32, i32
  }
  func.func @transform_6(%arg0: i32) -> (i32, i32) {
    %c0_i32 = arith.constant 0 : i32
    %c0_i32_0 = arith.constant 0 : i32
    return %c0_i32, %arg0 : i32, i32
  }
}

</mosaic_0001>

<bundles_post_ra>
// kernel: tpu_custom_call.1
= control target key start
LH: loop header
LB: loop body
LE: loop exit
PB: predicated region body
PF: predicated region fallthrough
CT: control target
= control target key end

     0   :  { %v776_v2 = vmov 1   ;;  %v777_v7 = vmov 0   ;;  %s1062_s0 = inlined_call_operand.vmem [shape: f32[2,49], index: 0, kind: input, shape index: {}]   ;;  %s1063_s1 = inlined_call_operand.vmem [shape: f32[128,2], index: 1, kind: input, shape index: {}]   ;;  %s1064_s2 = inlined_call_operand.vmem [shape: f32[128,1], index: 2, kind: input, shape index: {}]   ;;  %s1065_s3 = inlined_call_operand.vmem [shape: f32[8,128], index: 3, kind: input, shape index: {}]   ;;  %s1066_s4 = inlined_call_operand.vmem [shape: f32[8,1], index: 4, kind: input, shape index: {}]   ;;  %s1067_s5 = inlined_call_operand.vmem [shape: s32[1,256], index: 5, kind: input, shape index: {}]   ;;  %s1068_s6 = inlined_call_operand.hbm [shape: f32[8,256], index: 6, kind: output, shape index: {}]  }
   0x1   :  { %v31_v0 = vld [vmem:[%s1063_s1 + $0x10] sm:$0xff]  ;;  %v29_v1 = vld [vmem:[%s1063_s1] sm:$0xff]  ;;  %736 = vset.pattern.permute.xlu0 %v776_v2  ;;  %734 = vset.pattern.permute.xlu1 %v776_v2  ;;  %v30_v4 = vld [vmem:[%s1063_s1 + $0x8] sm:$0xff] }
   0x2   :  { %154 = vperm.xlu0 %736, %v31_v0   ;;  %146 = vperm.xlu1 %734, %v29_v1   ;;  %v33_v3 = vld [vmem:[%s1063_s1 + $0x20] sm:$0xff]  ;;  %v35_v5 = vld [vmem:[%s1063_s1 + $0x30] sm:$0xff]  ;;  %v32_v6 = vld [vmem:[%s1063_s1 + $0x18] sm:$0xff] }
   0x3   :  { %v37_v8 = vld [vmem:[%s1063_s1 + $0x40] sm:$0xff] }
   0x6   :  { %162 = vperm.xlu0 %736, %v33_v3   ;;  %150 = vperm.xlu1 %734, %v30_v4  }
   0xa   :  { %170 = vperm.xlu0 %736, %v35_v5   ;;  %735 = vset.pattern.permute.xlu1 %v777_v7 }
   0xb   :  { %62 = vperm.xlu1 %735, %v32_v6  }
   0xc   :  { %11 = vsyncpa [#allocation4], 0  ;;  %v39_v9 = vld [vmem:[%s1063_s1 + $0x50] sm:$0xff]  ;;  %v245_v10 = vld [vmem:[%s1064_s2] sm:$0xff]  ;;  %v778_v19 = vmov 0.0|0.0   ;;  %v125_v40 = vlaneseq  ;;  %vm779_vm0 = vmmov 0  }
   0xd   :  { %v41_v11 = vld [vmem:[%s1063_s1 + $0x60] sm:$0xff]  ;;  %v856_v12 = vld [vmem:[%s1063_s1 + $0x70] sm:$0xff]  ;;  %v34_v13 = vld [vmem:[%s1063_s1 + $0x28] sm:$0xff]  ;;  %691 = vmatprep.subr.bf16.mxu0 %v778_v19  ;;  %v780_v46 = vmov 0.0   ;;  %v781_v56 = vmov 1.0|1.0  }
   0xe   :  { %178 = vperm.xlu0 %736, %v37_v8   ;;  %v247_v14 = vld [vmem:[%s1064_s2 + $0x10] sm:$0xff]  ;;  %v246_v15 = vld [vmem:[%s1064_s2 + $0x8] sm:$0xff]  ;;  %v248_v16 = vld [vmem:[%s1064_s2 + $0x18] sm:$0xff]  ;;  %v944_v43 = vshrl.u32 %v125_v40, 7  ;;  %688 = vmatprep.mubr.msk.f32.mxu0 %vm779_vm0, %v780_v46 }
   0xf   :  { %737 = vset.pattern.permute.xlu1 %v776_v2  ;;  %v36_v17 = vld [vmem:[%s1063_s1 + $0x38] sm:$0xff]  ;;  %v250_v18 = vld [vmem:[%s1064_s2 + $0x28] sm:$0xff]  ;;  %v249_v21 = vld [vmem:[%s1064_s2 + $0x20] sm:$0xff]  ;;  %587 = vmatprep.mubr.f32.mxu1 %v780_v46 }
  0x10   :  { %158 = vperm.xlu1 %737, %v32_v6   ;;  %v252_v20 = vld [vmem:[%s1064_s2 + $0x38] sm:$0xff]  ;;  %v254_v22 = vld [vmem:[%s1064_s2 + $0x48] sm:$0xff]  ;;  %v374_v26 = vld [vmem:[%s1066_s4] sm:$0xff]  ;;  %v211_v47 = vsub.s32 1, %v944_v43  ;;  %v127_v48 = vsub.s32 0, %v944_v43  ;;  %v454_v50 = vadd.s32 8, %v944_v43 }
  0x11   :  { %v256_v23 = vld [vmem:[%s1064_s2 + $0x58] sm:$0xff]  ;;  %v38_v24 = vld [vmem:[%s1063_s1 + $0x48] sm:$0xff]  ;;  %v251_v27 = vld [vmem:[%s1064_s2 + $0x30] sm:$0xff] }
  0x12   :  { %186 = vperm.xlu0 %736, %v39_v9   ;;  %v258_v25 = vld [vmem:[%s1064_s2 + $0x68] sm:$0xff]  ;;  %v40_v28 = vld [vmem:[%s1063_s1 + $0x58] sm:$0xff]  ;;  %v253_v29 = vld [vmem:[%s1064_s2 + $0x40] sm:$0xff] }
  0x13   :  { %v42_v30 = vld [vmem:[%s1063_s1 + $0x68] sm:$0xff]  ;;  %v255_v31 = vld [vmem:[%s1064_s2 + $0x50] sm:$0xff]  ;;  %v44_v32 = vld [vmem:[%s1063_s1 + $0x78] sm:$0xff] }
  0x14   :  { %738 = vset.pattern.permute.xlu1 %v777_v7  ;;  %v257_v33 = vld [vmem:[%s1064_s2 + $0x60] sm:$0xff]  ;;  %v259_v36 = vld [vmem:[%s1064_s2 + $0x70] sm:$0xff]  ;;  %v260_v39 = vld [vmem:[%s1064_s2 + $0x78] sm:$0xff] }
  0x15   :  { %263 = vperm.xlu1 %738, %v245_v10   ;;  %v460_v51 = vld [vmem:[%s1067_s5] sm:$0x3] }
  0x16   :  { %194 = vperm.xlu0 %736, %v41_v11   ;;  %v958_v52 = vrot.slane %v460_v51, %v211_v47  ;;  %v960_v53 = vrot.slane %v460_v51, %v127_v48  ;;  %v28_v59 = vld [vmem:[%s1062_s0] sm:$0x3] }
  0x17   :  { %v977_v62 = vrot.slane %v28_v59, %v211_v47  ;;  %v979_v63 = vrot.slane %v28_v59, %v127_v48 }
  0x18   :  { %vm470_vm1 = vcmp.eq.s32.totalorder %v944_v43, %v958_v52  ;;  %vm472_vm2 = vcmp.eq.s32.totalorder %v454_v50, %v958_v52  ;;  %vm469_vm3 = vcmp.eq.s32.totalorder %v944_v43, %v960_v53  ;;  %vm471_vm4 = vcmp.eq.s32.totalorder %v454_v50, %v960_v53 }
  0x19   :  { %67 = vperm.xlu1 %738, %v33_v3   ;;  %vm715_vm5 = vmpackc.low %vm472_vm2, %vm470_vm1 }
  0x1a   :  { %202 = vperm.xlu0 %736, %v856_v12   ;;  %716 = vmatprep.subr.msk.bf16.mxu1 %vm715_vm5, %v781_v56  ;;  %vm717_vm6 = vmpackc.low %vm471_vm4, %vm469_vm3  ;;  %vm516_vm3 = vcmask 1040384  }
  0x1b   :  { %718 = vmatpush1.bf16.msk.msra.mxu1 %vm717_vm6, %v781_v56  ;;  %vm450_vm6 = vcmask 400384  }
  0x1d   :  { %72 = vperm.xlu1 %738, %v34_v13  }
  0x1e   :  { %749 = vset.pattern.permute.xlu0 %v777_v7 }
  0x1f   :  { %47 = vperm.xlu0 %749, %v29_v1  }
  0x21   :  { %739 = vset.pattern.permute.xlu1 %v776_v2 }
  0x22   :  { %166 = vperm.xlu1 %739, %v34_v13  }
  0x23   :  { %52 = vperm.xlu0 %749, %v30_v4  }
  0x26   :  { %740 = vset.pattern.permute.xlu1 %v777_v7 }
  0x27   :  { %57 = vperm.xlu0 %749, %v31_v0   ;;  %273 = vperm.xlu1 %740, %v247_v14  }
  0x2b   :  { %268 = vperm.xlu0 %749, %v246_v15   ;;  %77 = vperm.xlu1 %740, %v35_v5  }
  0x2f   :  { %278 = vperm.xlu0 %749, %v248_v16   ;;  %82 = vperm.xlu1 %740, %v36_v17  }
  0x33   :  { %288 = vperm.xlu0 %749, %v250_v18   ;;  %741 = vset.pattern.permute.xlu1 %v776_v2 }
  0x34   :  { %174 = vperm.xlu1 %741, %v36_v17  }
  0x37   :  { %298 = vperm.xlu0 %749, %v252_v20  }
  0x38   :  { %742 = vset.pattern.permute.xlu1 %v777_v7 }
  0x39   :  { %283 = vperm.xlu1 %742, %v249_v21  }
  0x3b   :  { %308 = vperm.xlu0 %749, %v254_v22  }
  0x3d   :  { %87 = vperm.xlu1 %742, %v37_v8  }
  0x3f   :  { %318 = vperm.xlu0 %749, %v256_v23  }
  0x41   :  { %92 = vperm.xlu1 %742, %v38_v24  }
  0x43   :  { %328 = vperm.xlu0 %749, %v258_v25  }
  0x45   :  { %743 = vset.pattern.permute.xlu1 %v776_v2 }
  0x46   :  { %182 = vperm.xlu1 %743, %v38_v24  }
  0x47   :  { %377 = vperm.xlu0 %749, %v374_v26  }
  0x4a   :  { %744 = vset.pattern.permute.xlu1 %v777_v7 }
  0x4b   :  { %293 = vperm.xlu1 %744, %v251_v27  }
  0x4f   :  { %97 = vperm.xlu1 %744, %v39_v9  }
  0x53   :  { %102 = vperm.xlu1 %744, %v40_v28  }
  0x57   :  { %745 = vset.pattern.permute.xlu1 %v776_v2 }
  0x58   :  { %190 = vperm.xlu1 %745, %v40_v28  }
  0x5c   :  { %746 = vset.pattern.permute.xlu1 %v777_v7 }
  0x5d   :  { %303 = vperm.xlu1 %746, %v253_v29  }
  0x61   :  { %107 = vperm.xlu1 %746, %v41_v11  }
  0x65   :  { %112 = vperm.xlu1 %746, %v42_v30  }
  0x69   :  { %747 = vset.pattern.permute.xlu1 %v776_v2 }
  0x6a   :  { %198 = vperm.xlu1 %747, %v42_v30  }
  0x6e   :  { %748 = vset.pattern.permute.xlu1 %v777_v7 }
  0x6f   :  { %313 = vperm.xlu1 %748, %v255_v31  }
  0x73   :  { %117 = vperm.xlu1 %748, %v856_v12  }
  0x77   :  { %122 = vperm.xlu1 %748, %v44_v32  }
  0x7b   :  { %750 = vset.pattern.permute.xlu1 %v776_v2 }
  0x7c   :  { %206 = vperm.xlu1 %750, %v44_v32  }
  0x80   :  { %751 = vset.pattern.permute.xlu1 %v777_v7 }
  0x81   :  { %323 = vperm.xlu1 %751, %v257_v33   ;;  %v147_v34 = vpop.permute.xlu1 %146  ;;  %v155_v35 = vpop.permute.xlu0 %154 }
  0x82   :  { %v213_v3 = vmul.f32 %v977_v62, %v147_v34  ;;  %v215_v4 = vmul.f32 %v977_v62, %v155_v35 }
  0x85   :  { %333 = vperm.xlu1 %751, %v259_v36   ;;  %v151_v37 = vpop.permute.xlu1 %150  ;;  %v937_v38 = vpop.permute.xlu0 %162 }
  0x86   :  { %v214_v9 = vmul.f32 %v977_v62, %v151_v37  ;;  %v217_v31 = vmul.f32 %v977_v62, %v937_v38 }
  0x89   :  { %338 = vperm.xlu1 %751, %v260_v39   ;;  %v942_v41 = vpop.permute.xlu0 %170 }
  0x8a   :  { %v63_v42 = vpop.permute.xlu1 %62  ;;  %v219_v59 = vmul.f32 %v977_v62, %v942_v41 }
  0x8b   :  { %v132_v17 = vmul.f32 %v979_v63, %v63_v42 }
  0x8d   :  { %v946_v44 = vpop.permute.xlu0 %178 }
  0x8f   :  { %v159_v45 = vpop.permute.xlu1 %158 }
  0x90   :  { %v216_v11 = vmul.f32 %v977_v62, %v159_v45 }
  0x91   :  { %v952_v49 = vpop.permute.xlu0 %186 }
  0x92   :  { %v232_v22 = vadd.f32 %v216_v11, %v132_v17 }
  0x94   :  { %v264_v54 = vpop.permute.xlu1 %263 }
  0x95   :  { %v962_v55 = vpop.permute.xlu0 %194 }
  0x98   :  { %v68_v57 = vpop.permute.xlu1 %67 }
  0x99   :  { %v972_v58 = vpop.permute.xlu0 %202  ;;  %v133_v32 = vmul.f32 %v979_v63, %v68_v57 }
  0x9b   :  { %v233_v40 = vadd.f32 %v217_v31, %v133_v32  ;;  %v223_v31 = vmul.f32 %v977_v62, %v952_v49 }
  0x9c   :  { %v73_v60 = vpop.permute.xlu1 %72 }
  0x9d   :  { %v134_v33 = vmul.f32 %v979_v63, %v73_v60 }
  0x9e   :  { %v48_v61 = vpop.permute.xlu0 %47 }
  0x9f   :  { %v129_v0 = vmul.f32 %v979_v63, %v48_v61 }
  0xa1   :  { %v167_v1 = vpop.permute.xlu1 %166  ;;  %v229_v5 = vadd.f32 %v213_v3, %v129_v0 }
  0xa2   :  { %v53_v2 = vpop.permute.xlu0 %52  ;;  %v218_v28 = vmul.f32 %v977_v62, %v167_v1 }
  0xa3   :  { %v130_v6 = vmul.f32 %v979_v63, %v53_v2  ;;  %v341_v14 = vadd.f32 %v264_v54, %v229_v5 }
  0xa4   :  { %v234_v37 = vadd.f32 %v218_v28, %v134_v33 }
  0xa5   :  { %v230_v13 = vadd.f32 %v214_v9, %v130_v6  ;;  %v357_v23 = vmax.f32 %v341_v14, 0.0 }
  0xa6   :  { %v58_v7 = vpop.permute.xlu0 %57  ;;  %v274_v8 = vpop.permute.xlu1 %273 }
  0xa7   :  { %v131_v10 = vmul.f32 %v979_v63, %v58_v7 }
  0xa9   :  { %v231_v12 = vadd.f32 %v215_v4, %v131_v10 }
  0xaa   :  { %v269_v15 = vpop.permute.xlu0 %268  ;;  %v78_v16 = vpop.permute.xlu1 %77 }
  0xab   :  { %v342_v18 = vadd.f32 %v269_v15, %v230_v13  ;;  %v343_v20 = vadd.f32 %v274_v8, %v231_v12  ;;  %v135_v60 = vmul.f32 %v979_v63, %v78_v16  ;;  %v221_v12 = vmul.f32 %v977_v62, %v946_v44 }
  0xad   :  { %v358_v21 = vmax.f32 %v342_v18, 0.0  ;;  %v359_v29 = vmax.f32 %v343_v20, 0.0  ;;  %v235_v3 = vadd.f32 %v219_v59, %v135_v60 }
  0xae   :  { %v279_v24 = vpop.permute.xlu0 %278  ;;  %v83_v25 = vpop.permute.xlu1 %82 }
  0xaf   :  { %v344_v26 = vadd.f32 %v279_v24, %v232_v22  ;;  %v692_v27 = vpack.c.bf16 %v358_v21, %v357_v23  ;;  %v136_v57 = vmul.f32 %v979_v63, %v83_v25 }
  0xb1   :  { %v360_v30 = vmax.f32 %v344_v26, 0.0  ;;  %693 = vmatpush3.bf16.msra.mxu0 %v692_v27 }
  0xb2   :  { %694 = vmatprep.subr.bf16.mxu0 %v778_v19  ;;  %v289_v36 = vpop.permute.xlu0 %288 }
  0xb3   :  { %v695_v34 = vpack.c.bf16 %v360_v30, %v359_v29  ;;  %v175_v35 = vpop.permute.xlu1 %174  ;;  %v346_v39 = vadd.f32 %v289_v36, %v234_v37 }
  0xb4   :  { %v220_v54 = vmul.f32 %v977_v62, %v175_v35 }
  0xb5   :  { %696 = vmatpush3.bf16.msra.mxu0 %v695_v34  ;;  %v362_v47 = vmax.f32 %v346_v39, 0.0 }
  0xb6   :  { %697 = vmatprep.subr.bf16.mxu0 %v778_v19  ;;  %v236_v61 = vadd.f32 %v220_v54, %v136_v57  ;;  %v299_v1 = vpop.permute.xlu0 %298 }
  0xb8   :  { %v284_v42 = vpop.permute.xlu1 %283  ;;  %v348_v2 = vadd.f32 %v299_v1, %v236_v61  ;;  %v227_v1 = vmul.f32 %v977_v62, %v972_v58  ;;  %v373_v58 = vld [vmem:[%s1065_s3] sm:$0xff]  ;;  %s782_s3 = smov [#allocation3]  }
  0xb9   :  { %v345_v45 = vadd.f32 %v284_v42, %v233_v40  ;;  %s602_s16 = sshll.u32 %s782_s3, 4  ;;  %s603_s16 = int_to_ptr.vmem [resolvable:$true] %s602_s16 }
  0xba   :  { %v364_v6 = vmax.f32 %v348_v2, 0.0  ;;  %v309_v16 = vpop.permute.xlu0 %308  ;;  %s752_s17 = scalar_lea.vmem %s603_s16, 256  ;;  %p757_p1 = scmp.lt.s32.totalorder %s603_s16, %s603_s16 }
  0xbb   :  { %v361_v48 = vmax.f32 %v345_v45, 0.0  ;;  %p753_p0 = scmp.ne.s32.totalorder %s603_s16, %s752_s17  ;;  %p758_p2 = scmp.lt.s32.totalorder %s752_s17, %s752_s17 }
  0xbc   :  { %v88_v50 = vpop.permute.xlu1 %87 }
  0xbd   :  { %v698_v51 = vpack.c.bf16 %v362_v47, %v361_v48  ;;  %v137_v13 = vmul.f32 %v979_v63, %v88_v50  ;;  %p759_p3 = por %p758_p2, %p757_p1 }
  0xbe   :  { %v319_v32 = vpop.permute.xlu0 %318 }
  0xbf   :  { %699 = vmatpush3.bf16.msra.mxu0 %v698_v51  ;;  %v237_v18 = vadd.f32 %v221_v12, %v137_v13  ;;  %p760_p4 = pnand %p759_p3, %p753_p0 }
  0xc0   :  { %v93_v38 = vpop.permute.xlu1 %92  ;;  %700 = vmatprep.subr.bf16.mxu0 %v778_v19 }
  0xc1   :  { %v138_v41 = vmul.f32 %v979_v63, %v93_v38  ;;  %v225_v38 = vmul.f32 %v977_v62, %v962_v55 }
  0xc2   :  { %v329_v54 = vpop.permute.xlu0 %328 }
  0xc5   :  { %v183_v0 = vpop.permute.xlu1 %182 }
  0xc6   :  { %v222_v11 = vmul.f32 %v977_v62, %v183_v0 }
  0xc8   :  { %v238_v14 = vadd.f32 %v222_v11, %v138_v41 }
  0xca   :  { %v294_v4 = vpop.permute.xlu1 %293  ;;  %v350_v17 = vadd.f32 %v309_v16, %v238_v14  ;;  %v458_v14 = vadd.s32 40, %v944_v43 }
  0xcb   :  { %v347_v5 = vadd.f32 %v294_v4, %v235_v3 }
  0xcc   :  { %v366_v22 = vmax.f32 %v350_v17, 0.0  ;;  %vm480_vm14 = vcmp.eq.s32.totalorder %v458_v14, %v958_v52  ;;  %vm479_vm0 = vcmp.eq.s32.totalorder %v458_v14, %v960_v53 }
  0xcd   :  { %v363_v7 = vmax.f32 %v347_v5, 0.0 }
  0xce   :  { %v98_v8 = vpop.permute.xlu1 %97 }
  0xcf   :  { %v701_v9 = vpack.c.bf16 %v364_v6, %v363_v7  ;;  %v139_v28 = vmul.f32 %v979_v63, %v98_v8 }
  0xd1   :  { %702 = vmatpush3.bf16.msra.mxu0 %v701_v9  ;;  %v239_v34 = vadd.f32 %v223_v31, %v139_v28 }
  0xd2   :  { %v103_v10 = vpop.permute.xlu1 %102  ;;  %703 = vmatprep.subr.bf16.mxu0 %v778_v19 }
  0xd3   :  { %v140_v44 = vmul.f32 %v979_v63, %v103_v10 }
  0xd7   :  { %v191_v15 = vpop.permute.xlu1 %190 }
  0xd8   :  { %v224_v27 = vmul.f32 %v977_v62, %v191_v15  ;;  %v459_v15 = vadd.s32 48, %v944_v43 }
  0xda   :  { %v240_v29 = vadd.f32 %v224_v27, %v140_v44  ;;  %vm482_vm4 = vcmp.eq.s32.totalorder %v459_v15, %v958_v52  ;;  %vm481_vm5 = vcmp.eq.s32.totalorder %v459_v15, %v960_v53 }
  0xdb   :  { %v623_v16 = vsel %vm482_vm4, 1.0, %v780_v46  ;;  %v622_v17 = vsel %vm481_vm5, 1.0, %v780_v46 }
  0xdc   :  { %v304_v20 = vpop.permute.xlu1 %303  ;;  %v352_v33 = vadd.f32 %v319_v32, %v240_v29 }
  0xdd   :  { %v349_v21 = vadd.f32 %v304_v20, %v237_v18  ;;  %v378_v18 = vpop.permute.xlu0 %377 }
  0xde   :  { %v368_v37 = vmax.f32 %v352_v33, 0.0 }
  0xdf   :  { %v365_v23 = vmax.f32 %v349_v21, 0.0 }
  0xe0   :  { %v108_v24 = vpop.permute.xlu1 %107 }
  0xe1   :  { %v704_v25 = vpack.c.bf16 %v366_v22, %v365_v23  ;;  %v141_v50 = vmul.f32 %v979_v63, %v108_v24 }
  0xe3   :  { %705 = vmatpush3.bf16.msra.mxu0 %v704_v25  ;;  %v241_v59 = vadd.f32 %v225_v38, %v141_v50 }
  0xe4   :  { %v113_v26 = vpop.permute.xlu1 %112  ;;  %706 = vmatprep.subr.bf16.mxu0 %v778_v19 }
  0xe5   :  { %v142_v48 = vmul.f32 %v979_v63, %v113_v26 }
  0xe9   :  { %v199_v30 = vpop.permute.xlu1 %198 }
  0xea   :  { %v226_v47 = vmul.f32 %v977_v62, %v199_v30 }
  0xec   :  { %v242_v49 = vadd.f32 %v226_v47, %v142_v48 }
  0xee   :  { %v314_v35 = vpop.permute.xlu1 %313  ;;  %v354_v57 = vadd.f32 %v329_v54, %v242_v49 }
  0xef   :  { %v351_v36 = vadd.f32 %v314_v35, %v239_v34 }
  0xf0   :  { %v370_v4 = vmax.f32 %v354_v57, 0.0 }
  0xf1   :  { %v367_v39 = vmax.f32 %v351_v36, 0.0 }
  0xf2   :  { %v118_v40 = vpop.permute.xlu1 %117 }
  0xf3   :  { %v707_v42 = vpack.c.bf16 %v368_v37, %v367_v39  ;;  %v143_v61 = vmul.f32 %v979_v63, %v118_v40 }
  0xf5   :  { %708 = vmatpush3.bf16.msra.mxu0 %v707_v42  ;;  %v243_v8 = vadd.f32 %v227_v1, %v143_v61 }
  0xf6   :  { %v123_v45 = vpop.permute.xlu1 %122  ;;  %709 = vmatprep.subr.bf16.mxu0 %v778_v19 }
  0xf7   :  { %v144_v6 = vmul.f32 %v979_v63, %v123_v45  ;;  %v456_v63 = vadd.s32 24, %v944_v43 }
  0xf9   :  { %vm476_vm8 = vcmp.eq.s32.totalorder %v456_v63, %v958_v52  ;;  %vm475_vm11 = vcmp.eq.s32.totalorder %v456_v63, %v960_v53 }
  0xfb   :  { %v207_v51 = vpop.permute.xlu1 %206 }
  0xfc   :  { %v228_v2 = vmul.f32 %v977_v62, %v207_v51  ;;  %v455_v62 = vadd.s32 16, %v944_v43 }
  0xfe   :  { %v244_v9 = vadd.f32 %v228_v2, %v144_v6  ;;  %vm474_vm7 = vcmp.eq.s32.totalorder %v455_v62, %v958_v52  ;;  %vm473_vm10 = vcmp.eq.s32.totalorder %v455_v62, %v960_v53 }
  0xff   :  { %vm719_vm9 = vmpackc.low %vm476_vm8, %vm474_vm7 }
 0x100   :  { %v324_v60 = vpop.permute.xlu1 %323  ;;  %720 = vmatprep.subr.msk.bf16.mxu1 %vm719_vm9, %v781_v56  ;;  %vm721_vm12 = vmpackc.low %vm475_vm11, %vm473_vm10 }
 0x101   :  { %v353_v0 = vadd.f32 %v324_v60, %v241_v59  ;;  %722 = vmatpush1.bf16.msk.msra.mxu1 %vm721_vm12, %v781_v56 }
 0x103   :  { %v369_v3 = vmax.f32 %v353_v0, 0.0 }
 0x104   :  { %v334_v5 = vpop.permute.xlu1 %333 }
 0x105   :  { %v710_v7 = vpack.c.bf16 %v370_v4, %v369_v3  ;;  %v355_v55 = vadd.f32 %v334_v5, %v243_v8 }
 0x107   :  { %711 = vmatpush3.bf16.msra.mxu0 %v710_v7  ;;  %v371_v41 = vmax.f32 %v355_v55, 0.0 }
 0x108   :  { %v339_v10 = vpop.permute.xlu1 %338  ;;  %712 = vmatprep.subr.bf16.mxu0 %v778_v19  ;;  %v457_v19 = vadd.s32 32, %v944_v43 }
 0x109   :  { %v356_v11 = vadd.f32 %v339_v10, %v244_v9 }
 0x10a   :  { %vm478_vm13 = vcmp.eq.s32.totalorder %v457_v19, %v958_v52  ;;  %vm477_vm15 = vcmp.eq.s32.totalorder %v457_v19, %v960_v53 }
 0x10b   :  { %v372_v12 = vmax.f32 %v356_v11, 0.0  ;;  %vm723_vm1 = vmpackc.low %vm480_vm14, %vm478_vm13 }
 0x10c   :  { %724 = vmatprep.subr.msk.bf16.mxu1 %vm723_vm1, %v781_v56  ;;  %vm725_vm2 = vmpackc.low %vm479_vm0, %vm477_vm15 }
 0x10d   :  { %v713_v13 = vpack.c.bf16 %v372_v12, %v371_v41  ;;  %726 = vmatpush1.bf16.msk.msra.mxu1 %vm725_vm2, %v781_v56 }
 0x10e   :  { %636 = vmatprep.subr.msk.mxu1 %vm516_vm3, %v623_v16 }
 0x10f   :  { %714 = vmatpush3.bf16.msra.mxu0 %v713_v13 }
 0x111   :  { %637 = vmatpush1.msk.msra.mxu1 %vm516_vm3, %v622_v17 }
 0x112   :  { %689 = vmatmul.mubr.f32.vlgmr.msra.gmra.mrb[0].mxu0 %v373_v58 }
 0x1e5   :  { %v446_v20 = vpop.f32.mrb[0].mxu0 }
 0x1e6   :  { %v447_v43 = vadd.f32 %v446_v20, %v378_v18  ;;  %v690_v21 = vpop.f32.mrb[1].mxu0 }
 0x1e8   :  { %451 = vst.msk [vmem:[#allocation2] sm:$0xff] %vm450_vm6, %v447_v43 }
 0x1ef   :  { %v511_v22 = vld [vmem:[#allocation2] sm:$0xff] }
 0x1f0   :  { %638 = vmatmul.mubr.msk.f32.vlgmr.msra.gmra.mrb[0].mxu1 %vm450_vm6, %v511_v22 }
 0x2c3   :  { %v589_v56 = vpop.f32.mrb[0].mxu1 }
 0x2c4   :  { %594 = vst [vmem:[#allocation3] sm:$0xff] %v589_v56  ;;  %v591_v52 = vpop.f32.mrb[1].mxu1 }
 0x2c5   :  { %595 = vst [vmem:[#allocation3 + $0x8] sm:$0xff] %v591_v52 }
 0x2c6   :  { %763 = shalt.err (!%p760_p4)
}
 0x2c7   :  { %s764_s20 = scalar_lea.hbm %s1068_s6, 256 }
 0x2c8   :  { %p765_p5 = scmp.ne.s32.totalorder %s1068_s6, %s764_s20  ;;  %p768_p6 = scmp.lt.u32.totalorder %s764_s20, %s1068_s6 }
 0x2ca   :  { %p770_p7 = pnand %p768_p6, %p765_p5 }
 0x2cc   :  { %773 = shalt.err (!%p770_p7)
}
 0x2cd   :  { %605 = dma.vmem_to_hbm [thread:$0]  %s603_s16, 256, %s1068_s6, [#allocation4]  }
 0x2ce   :  { %774 = dma.done.wait [#allocation4], 256  }
 0x2cf   :  { %775 = vsyncadd [#allocation4], 4294967040 }
 0x2d0   :  { %609 = vsyncpa [#allocation4], 1 }

</bundles_post_ra>
